<compile_context>
chip_gen: v7x
topology: tpu7x:2x2x1
jax: 0.10.0
libtpu: 0.0.40
codegen_flags: <defaults>
</compile_context>

<pallas_src>
import functools

import jax
import jax.numpy as jnp
from jax.experimental import pallas as pl
from jax.experimental.pallas import tpu as pltpu


def _round_up(n, m):
    return ((n + m - 1) // m) * m


def _mlp_head(x_ref, w1_ref, b1_ref, w2_ref, b2_ref, wh_ref, bh_ref):
    """relu(x@W1+b1) -> relu(.@W2+b2) -> .@Wh+bh  (Wh is [wo] or fused [wo|wv])."""
    x = x_ref[...]
    h = jnp.dot(x, w1_ref[...], preferred_element_type=jnp.float32) + b1_ref[...]
    h = jnp.maximum(h, 0.0)
    # TODO(synk): nn.Dropout is identity in eval mode; training-mode RNG dropout not implemented.
    h = jnp.dot(h, w2_ref[...], preferred_element_type=jnp.float32) + b2_ref[...]
    h = jnp.maximum(h, 0.0)
    return jnp.dot(h, wh_ref[...], preferred_element_type=jnp.float32) + bh_ref[...]


def _plain_kernel(x_ref, w1_ref, b1_ref, w2_ref, b2_ref, wo_ref, bo_ref, out_ref):
    out_ref[...] = _mlp_head(x_ref, w1_ref, b1_ref, w2_ref, b2_ref, wo_ref, bo_ref)


def _dueling_kernel(x_ref, w1_ref, b1_ref, w2_ref, b2_ref, wh_ref, bh_ref,
                    out_ref, sum_ref, *, batch, tile_b, action_size):
    """Per-tile: write (sv + adv) into the resident output and accumulate the
    masked global sum(adv).  Last tile: subtract the global mean in place."""
    i = pl.program_id(0)

    @pl.when(i == 0)
    def _init():
        sum_ref[...] = jnp.zeros_like(sum_ref)

    head = _mlp_head(x_ref, w1_ref, b1_ref, w2_ref, b2_ref, wh_ref, bh_ref)
    adv = head[:, :action_size]
    sv = head[:, action_size:action_size + 1]

    # Global mean must ignore batch-padding rows (they see relu(b1), not zeros).
    row = i * tile_b + jax.lax.broadcasted_iota(jnp.int32, (tile_b, 1), 0)
    adv_valid = jnp.where(row < batch, adv, 0.0)
    sum_ref[...] += jnp.sum(adv_valid, keepdims=True)

    start = pl.multiple_of(i * tile_b, tile_b)
    out_ref[pl.ds(start, tile_b), :] = sv + adv

    @pl.when(i == pl.num_programs(0) - 1)
    def _finalize():
        mean = sum_ref[...] * (1.0 / float(batch * action_size))
        out_ref[...] = out_ref[...] - mean


def qmodelnet_forward(x, params, *, dueling, tile_b=512):
    """x: (B, state_size) f32.  params: dict of pre-transposed weights/biases."""
    B, S = x.shape
    A = params["wo"].shape[1]

    # Batch tile: multiple of 8 sublanes, large enough to amortize per-grid-step
    # overhead, small enough to double-buffer comfortably in VMEM.
    tb = min(tile_b, _round_up(B, 8))
    num_tiles = pl.cdiv(B, tb)
    b_pad = num_tiles * tb
    if b_pad != B:
        x = jnp.pad(x, ((0, b_pad - B), (0, 0)))

    def resident(a):  # whole array, DMA'd once, stays in VMEM across the grid
        return pl.BlockSpec(a.shape, lambda i: (0, 0))

    if not dueling:
        out = pl.pallas_call(
            _plain_kernel,
            out_shape=jax.ShapeDtypeStruct((b_pad, A), jnp.float32),
            grid=(num_tiles,),
            in_specs=[pl.BlockSpec((tb, S), lambda i: (i, 0)),
                      resident(params["w1"]), resident(params["b1"]),
                      resident(params["w2"]), resident(params["b2"]),
                      resident(params["wo"]), resident(params["bo"])],
            out_specs=pl.BlockSpec((tb, A), lambda i: (i, 0)),
            compiler_params=pltpu.CompilerParams(
                dimension_semantics=("parallel",)),
        )(x, params["w1"], params["b1"], params["w2"], params["b2"],
          params["wo"], params["bo"])
        return out[:B]

    # Dueling: fused head [wo | wv] -> one matmul yields [advantage | value].
    w_head, b_head = params["w_head"], params["b_head"]

    # Output resident in VMEM across the grid: ~b_pad * 512 B (lanes padded to
    # 128), negligible for any realistic DQN batch size.
    out = pl.pallas_call(
        functools.partial(_dueling_kernel, batch=B, tile_b=tb, action_size=A),
        out_shape=jax.ShapeDtypeStruct((b_pad, A), jnp.float32),
        grid=(num_tiles,),
        in_specs=[pl.BlockSpec((tb, S), lambda i: (i, 0)),
                  resident(params["w1"]), resident(params["b1"]),
                  resident(params["w2"]), resident(params["b2"]),
                  resident(w_head), resident(b_head)],
        out_specs=pl.BlockSpec((b_pad, A), lambda i: (0, 0)),
        scratch_shapes=[pltpu.VMEM((1, 1), jnp.float32)],
        compiler_params=pltpu.CompilerParams(
            dimension_semantics=("arbitrary",)),
    )(x, params["w1"], params["b1"], params["w2"], params["b2"], w_head, b_head)
    return out[:B]


def init_params(key, state_size, hidden_layers, action_size):
    """Deterministic synthetic init. Weights stored as [in, out] (transposed vs torch)."""
    ks = jax.random.split(key, 8)
    h1, h2 = hidden_layers

    def lin(kw, kb, fan_in, fan_out):
        bound = 1.0 / jnp.sqrt(jnp.float32(fan_in))
        w = jax.random.uniform(kw, (fan_in, fan_out), jnp.float32, -bound, bound)
        b = jax.random.uniform(kb, (1, fan_out), jnp.float32, -bound, bound)
        return w, b

    w1, b1 = lin(ks[0], ks[1], state_size, h1)
    w2, b2 = lin(ks[2], ks[3], h1, h2)
    wo, bo = lin(ks[4], ks[5], h2, action_size)
    wv, bv = lin(ks[6], ks[7], h2, 1)
    # Fused dueling head: one matmul produces [advantage | state_value].
    w_head = jnp.concatenate([wo, wv], axis=1)
    b_head = jnp.concatenate([bo, bv], axis=1)
    return dict(w1=w1, b1=b1, w2=w2, b2=b2, wo=wo, bo=bo, wv=wv, bv=bv,
                w_head=w_head, b_head=b_head)


def reference_forward(x, p, *, dueling):
    h = jnp.maximum(x @ p["w1"] + p["b1"], 0.0)
    h = jnp.maximum(h @ p["w2"] + p["b2"], 0.0)
    adv = h @ p["wo"] + p["bo"]
    if dueling:
        sv = h @ p["wv"] + p["bv"]
        return sv + (adv - jnp.mean(adv))
    return adv


if __name__ == "__main__":
    key = jax.random.PRNGKey(0)
    k_x, k_p, k_x2 = jax.random.split(key, 3)

    state_size = 16
    hidden_layers = [64, 64]
    action_size = 4
    params = init_params(k_p, state_size, hidden_layers, action_size)

    ok = True

    # Case 1: tiny batch (single tile).
    x = jax.random.normal(k_x, (8, state_size), jnp.float32)
    for dueling in (False, True):
        out = jax.block_until_ready(qmodelnet_forward(x, params, dueling=dueling))
        ref = reference_forward(x, params, dueling=dueling)
        ok = ok and bool(jnp.allclose(out, ref, atol=1e-5, rtol=1e-5))

    # Case 2: multiple batch tiles + batch padding (exercises the grid, resident
    # weights, and the masked cross-tile global mean in the dueling head).
    x2 = jax.random.normal(k_x2, (40, state_size), jnp.float32)
    for dueling in (False, True):
        out = jax.block_until_ready(
            qmodelnet_forward(x2, params, dueling=dueling, tile_b=16))
        ref = reference_forward(x2, params, dueling=dueling)
        ok = ok and bool(jnp.allclose(out, ref, atol=1e-5, rtol=1e-5))

    print("KERNEL_OK" if ok else "KERNEL_MISMATCH")
</pallas_src>

<mosaic_0001>
module attributes {stable_mosaic.version = 11 : i64} {
  func.func @_plain_kernel(%arg0: i32, %arg1: memref<8x16xf32, #tpu.memory_space<vmem>>, %arg2: memref<16x64xf32, #tpu.memory_space<vmem>>, %arg3: memref<1x64xf32, #tpu.memory_space<vmem>>, %arg4: memref<64x64xf32, #tpu.memory_space<vmem>>, %arg5: memref<1x64xf32, #tpu.memory_space<vmem>>, %arg6: memref<64x4xf32, #tpu.memory_space<vmem>>, %arg7: memref<1x4xf32, #tpu.memory_space<vmem>>, %arg8: memref<8x4xf32, #tpu.memory_space<vmem>>) attributes {dimension_semantics = [#tpu.dimension_semantics<parallel>], iteration_bounds = array<i64: 1>, scalar_prefetch = 0 : i64, scratch_operands = 0 : i64, tpu.core_type = #tpu.core_type<tc>, window_params = [{transform_indices = @transform_0, window_bounds = array<i64: 8, 16>}, {pipeline_mode = #tpu.pipeline_mode<synchronous>, transform_indices = @transform_1, window_bounds = array<i64: 16, 64>}, {pipeline_mode = #tpu.pipeline_mode<synchronous>, transform_indices = @transform_2, window_bounds = array<i64: 1, 64>}, {pipeline_mode = #tpu.pipeline_mode<synchronous>, transform_indices = @transform_3, window_bounds = array<i64: 64, 64>}, {pipeline_mode = #tpu.pipeline_mode<synchronous>, transform_indices = @transform_4, window_bounds = array<i64: 1, 64>}, {pipeline_mode = #tpu.pipeline_mode<synchronous>, transform_indices = @transform_5, window_bounds = array<i64: 64, 4>}, {pipeline_mode = #tpu.pipeline_mode<synchronous>, transform_indices = @transform_6, window_bounds = array<i64: 1, 4>}, {transform_indices = @transform_7, window_bounds = array<i64: 8, 4>}]} {
    %c0 = arith.constant 0 : index
    %c0_0 = arith.constant 0 : index
    %0 = vector.load %arg1[%c0, %c0_0] : memref<8x16xf32, #tpu.memory_space<vmem>>, vector<8x16xf32>
    %c0_1 = arith.constant 0 : index
    %c0_2 = arith.constant 0 : index
    %1 = vector.load %arg2[%c0_1, %c0_2] : memref<16x64xf32, #tpu.memory_space<vmem>>, vector<16x64xf32>
    %cst = arith.constant dense<0.000000e+00> : vector<8x64xf32>
    %2 = tpu.matmul %0, %1, %cst {dimension_numbers = #tpu.dot_dimension_numbers<[1], [0], [0], [1], [0, 0, 1, 1], [], []>} : vector<8x16xf32>, vector<16x64xf32>, vector<8x64xf32> -> vector<8x64xf32>
    %c0_3 = arith.constant 0 : index
    %c0_4 = arith.constant 0 : index
    %3 = vector.load %arg3[%c0_3, %c0_4] : memref<1x64xf32, #tpu.memory_space<vmem>>, vector<1x64xf32>
    %4 = vector.broadcast %3 : vector<1x64xf32> to vector<8x64xf32>
    %5 = arith.addf %2, %4 : vector<8x64xf32>
    %cst_5 = arith.constant 0.000000e+00 : f32
    %6 = vector.broadcast %cst_5 : f32 to vector<8x64xf32>
    %7 = arith.maximumf %5, %6 : vector<8x64xf32>
    %c0_6 = arith.constant 0 : index
    %c0_7 = arith.constant 0 : index
    %8 = vector.load %arg4[%c0_6, %c0_7] : memref<64x64xf32, #tpu.memory_space<vmem>>, vector<64x64xf32>
    %cst_8 = arith.constant dense<0.000000e+00> : vector<8x64xf32>
    %9 = tpu.matmul %7, %8, %cst_8 {dimension_numbers = #tpu.dot_dimension_numbers<[1], [0], [0], [1], [0, 0, 1, 1], [], []>} : vector<8x64xf32>, vector<64x64xf32>, vector<8x64xf32> -> vector<8x64xf32>
    %c0_9 = arith.constant 0 : index
    %c0_10 = arith.constant 0 : index
    %10 = vector.load %arg5[%c0_9, %c0_10] : memref<1x64xf32, #tpu.memory_space<vmem>>, vector<1x64xf32>
    %11 = vector.broadcast %10 : vector<1x64xf32> to vector<8x64xf32>
    %12 = arith.addf %9, %11 : vector<8x64xf32>
    %cst_11 = arith.constant 0.000000e+00 : f32
    %13 = vector.broadcast %cst_11 : f32 to vector<8x64xf32>
    %14 = arith.maximumf %12, %13 : vector<8x64xf32>
    %c0_12 = arith.constant 0 : index
    %c0_13 = arith.constant 0 : index
    %15 = vector.load %arg6[%c0_12, %c0_13] : memref<64x4xf32, #tpu.memory_space<vmem>>, vector<64x4xf32>
    %cst_14 = arith.constant dense<0.000000e+00> : vector<8x4xf32>
    %16 = tpu.matmul %14, %15, %cst_14 {dimension_numbers = #tpu.dot_dimension_numbers<[1], [0], [0], [1], [0, 0, 1, 1], [], []>} : vector<8x64xf32>, vector<64x4xf32>, vector<8x4xf32> -> vector<8x4xf32>
    %c0_15 = arith.constant 0 : index
    %c0_16 = arith.constant 0 : index
    %17 = vector.load %arg7[%c0_15, %c0_16] : memref<1x4xf32, #tpu.memory_space<vmem>>, vector<1x4xf32>
    %18 = vector.broadcast %17 : vector<1x4xf32> to vector<8x4xf32>
    %19 = arith.addf %16, %18 : vector<8x4xf32>
    %c0_17 = arith.constant 0 : index
    %c0_18 = arith.constant 0 : index
    %20 = vector.load %arg8[%c0_17, %c0_18] : memref<8x4xf32, #tpu.memory_space<vmem>>, vector<8x4xf32>
    tpu.vector_store %arg8[%c0_17, %c0_18], %19 {strides = array<i32>} : memref<8x4xf32, #tpu.memory_space<vmem>>, vector<8x4xf32>,
    return
  }
  func.func @transform_0(%arg0: i32) -> (i32, i32) {
    %c0_i32 = arith.constant 0 : i32
    %c0_i32_0 = arith.constant 0 : i32
    return %arg0, %c0_i32 : i32, i32
  }
  func.func @transform_1(%arg0: i32) -> (i32, i32) {
    %c0_i32 = arith.constant 0 : i32
    %c0_i32_0 = arith.constant 0 : i32
    %c0_i32_1 = arith.constant 0 : i32
    return %c0_i32, %c0_i32_0 : i32, i32
  }
  func.func @transform_2(%arg0: i32) -> (i32, i32) {
    %c0_i32 = arith.constant 0 : i32
    %c0_i32_0 = arith.constant 0 : i32
    %c0_i32_1 = arith.constant 0 : i32
    return %c0_i32, %c0_i32_0 : i32, i32
  }
  func.func @transform_3(%arg0: i32) -> (i32, i32) {
    %c0_i32 = arith.constant 0 : i32
    %c0_i32_0 = arith.constant 0 : i32
    %c0_i32_1 = arith.constant 0 : i32
    return %c0_i32, %c0_i32_0 : i32, i32
  }
  func.func @transform_4(%arg0: i32) -> (i32, i32) {
    %c0_i32 = arith.constant 0 : i32
    %c0_i32_0 = arith.constant 0 : i32
    %c0_i32_1 = arith.constant 0 : i32
    return %c0_i32, %c0_i32_0 : i32, i32
  }
  func.func @transform_5(%arg0: i32) -> (i32, i32) {
    %c0_i32 = arith.constant 0 : i32
    %c0_i32_0 = arith.constant 0 : i32
    %c0_i32_1 = arith.constant 0 : i32
    return %c0_i32, %c0_i32_0 : i32, i32
  }
  func.func @transform_6(%arg0: i32) -> (i32, i32) {
    %c0_i32 = arith.constant 0 : i32
    %c0_i32_0 = arith.constant 0 : i32
    %c0_i32_1 = arith.constant 0 : i32
    return %c0_i32, %c0_i32_0 : i32, i32
  }
  func.func @transform_7(%arg0: i32) -> (i32, i32) {
    %c0_i32 = arith.constant 0 : i32
    %c0_i32_0 = arith.constant 0 : i32
    return %arg0, %c0_i32 : i32, i32
  }
}

</mosaic_0001>

<bundles_post_ra>
// kernel: tpu_custom_call.1
= control target key start
LH: loop header
LB: loop body
LE: loop exit
PB: predicated region body
PF: predicated region fallthrough
CT: control target
= control target key end

     0   :  { %12 = vsyncpa [#allocation3], 0  ;;  %s439_s24 = smov [#allocation2]   ;;  %s563_s0 = inlined_call_operand.vmem [shape: f32[8,16], index: 0, kind: input, shape index: {}]   ;;  %s564_s1 = inlined_call_operand.hbm [shape: f32[16,64], index: 1, kind: input, shape index: {}]   ;;  %s565_s2 = inlined_call_operand.vmem [shape: f32[1,64], index: 2, kind: input, shape index: {}]   ;;  %s566_s3 = inlined_call_operand.vmem [shape: f32[64,64], index: 3, kind: input, shape index: {}]   ;;  %s567_s4 = inlined_call_operand.vmem [shape: f32[1,64], index: 4, kind: input, shape index: {}]   ;;  %s568_s5 = inlined_call_operand.vmem [shape: f32[64,4], index: 5, kind: input, shape index: {}]   ;;  %s569_s6 = inlined_call_operand.vmem [shape: f32[1,4], index: 6, kind: input, shape index: {}]   ;;  %s570_s7 = inlined_call_operand.vmem [shape: f32[8,4], index: 7, kind: output, shape index: {}]  }
   0x1   :  { %s20_s25 = sshll.u32 %s439_s24, 4  ;;  %s415_s28 = scalar_lea.hbm %s564_s1, 256  ;;  %s21_s25 = int_to_ptr.vmem [resolvable:$true] %s20_s25 }
   0x2   :  { %p416_p0 = scmp.ne.s32.totalorder %s564_s1, %s415_s28  ;;  %p419_p1 = scmp.lt.u32.totalorder %s415_s28, %s564_s1 }
   0x4   :  { %p421_p2 = pnand %p419_p1, %p416_p0 }
   0x6   :  { %424 = shalt.err (!%p421_p2)
}
   0x7   :  { %s425_s10 = scalar_lea.vmem %s21_s25, 256  ;;  %p430_p4 = scmp.lt.s32.totalorder %s21_s25, %s21_s25 }
   0x8   :  { %p426_p3 = scmp.ne.s32.totalorder %s21_s25, %s425_s10  ;;  %p431_p5 = scmp.lt.s32.totalorder %s425_s10, %s425_s10 }
   0xa   :  { %p432_p6 = por %p431_p5, %p430_p4 }
   0xc   :  { %p433_p7 = pnand %p432_p6, %p426_p3 }
   0xe   :  { %436 = shalt.err (!%p433_p7)
}
   0xf   :  { %s440_s11 = smov 128   ;;  %s441_s12 = smov 8  }
  0x10   :  { %26 = dma.hbm_to_vmem [thread:$0]  %s564_s1, 256, %s21_s25, [#allocation3], %s440_s11, %s440_s11, %s441_s12  }
  0x11   :  { %437 = dma.done.wait [#allocation3], 256  }
  0x12   :  { %438 = vsyncadd [#allocation3], 4294967040  ;;  %v442_v0 = vmov 0.0|0.0   ;;  %vm443_vm0 = vmmov 0   ;;  %v444_v1 = vmov 0.0   ;;  %v41_v2 = vld [vmem:[#allocation2] sm:$0xff] }
  0x13   :  { %382 = vmatprep.subr.bf16.mxu0 %v442_v0  ;;  %341 = vmatprep.mubr.msk.f32.mxu0 %vm443_vm0, %v444_v1  ;;  %v42_v3 = vld [vmem:[#allocation2 + $0x8] sm:$0xff]  ;;  %v125_v5 = vld [vmem:[%s566_s3] sm:$0xff]  ;;  %v127_v7 = vld [vmem:[%s566_s3 + $0x10] sm:$0xff]  ;;  %vm50_vm1 = vcmask 130048   ;;  %vm140_vm2 = vcmask 523264   ;;  %vm303_vm3 = vcmask 31744  }
  0x14   :  { %385 = vmatprep.subr.bf16.mxu1 %v442_v0  ;;  %360 = vmatprep.mubr.msk.f32.mxu1 %vm443_vm0, %v444_v1  ;;  %v383_v4 = vpack.c.bf16 %v42_v3, %v41_v2  ;;  %v126_v6 = vld [vmem:[%s566_s3 + $0x8] sm:$0xff]  ;;  %v128_v9 = vld [vmem:[%s566_s3 + $0x18] sm:$0xff]  ;;  %v40_v10 = vld [vmem:[%s563_s0] sm:$0xff] }
  0x15   :  { %v386_v8 = vpack.c.bf16 %v126_v6, %v125_v5  ;;  %v389_v11 = vpack.c.bf16 %v128_v9, %v127_v7  ;;  %v129_v12 = vld [vmem:[%s566_s3 + $0x20] sm:$0xff]  ;;  %v130_v13 = vld [vmem:[%s566_s3 + $0x28] sm:$0xff]  ;;  %v131_v15 = vld [vmem:[%s566_s3 + $0x30] sm:$0xff] }
  0x16   :  { %384 = vmatpush3.bf16.msra.mxu0 %v383_v4  ;;  %v392_v14 = vpack.c.bf16 %v130_v13, %v129_v12  ;;  %v132_v16 = vld [vmem:[%s566_s3 + $0x38] sm:$0xff]  ;;  %v215_v18 = vld [vmem:[%s568_s5] sm:$0xff]  ;;  %v216_v19 = vld [vmem:[%s568_s5 + $0x8] sm:$0xff] }
  0x17   :  { %387 = vmatpush3.bf16.msra.mxu1 %v386_v8  ;;  %397 = vmatprep.subr.bf16.mxu0 %v442_v0  ;;  %v395_v17 = vpack.c.bf16 %v132_v16, %v131_v15  ;;  %v217_v20 = vld [vmem:[%s568_s5 + $0x10] sm:$0xff]  ;;  %v398_v21 = vpack.c.bf16 %v216_v19, %v215_v18  ;;  %v218_v22 = vld [vmem:[%s568_s5 + $0x18] sm:$0xff]  ;;  %v219_v24 = vld [vmem:[%s568_s5 + $0x20] sm:$0xff] }
  0x18   :  { %388 = vmatprep.subr.bf16.mxu1 %v442_v0  ;;  %v401_v23 = vpack.c.bf16 %v218_v22, %v217_v20  ;;  %v220_v25 = vld [vmem:[%s568_s5 + $0x28] sm:$0xff]  ;;  %v310_v27 = vld [vmem:[%s565_s2] ss:$0 sm:$0xff]  ;;  %v221_v32 = vld [vmem:[%s568_s5 + $0x30] sm:$0xff] }
  0x19   :  { %342 = vmatmul.mubr.msk.f32.vlgmr.msra.gmra.mrb[0].mxu0 %vm50_vm1, %v40_v10  ;;  %v404_v26 = vpack.c.bf16 %v220_v25, %v219_v24  ;;  %v222_v33 = vld [vmem:[%s568_s5 + $0x38] sm:$0xff]  ;;  %v312_v35 = vld [vmem:[%s567_s4] ss:$0 sm:$0xff] }
  0x1a   :  { %379 = vmatprep.mubr.msk.f32.mxu0 %vm443_vm0, %v444_v1  ;;  %399 = vmatpush3.bf16.msra.mxu0 %v398_v21  ;;  %v407_v34 = vpack.c.bf16 %v222_v33, %v221_v32  ;;  %v314_v40 = vld [vmem:[%s569_s6] ss:$0 sm:$0xff] }
  0x1b   :  { %390 = vmatpush3.bf16.msra.mxu1 %v389_v11  ;;  %400 = vmatprep.subr.bf16.mxu0 %v442_v0 }
  0x1c   :  { %391 = vmatprep.subr.bf16.mxu1 %v442_v0 }
  0x1e   :  { %402 = vmatpush3.bf16.msra.mxu0 %v401_v23 }
  0x1f   :  { %393 = vmatpush3.bf16.msra.mxu1 %v392_v14  ;;  %403 = vmatprep.subr.bf16.mxu0 %v442_v0 }
  0x20   :  { %394 = vmatprep.subr.bf16.mxu1 %v442_v0 }
  0x22   :  { %405 = vmatpush3.bf16.msra.mxu0 %v404_v26 }
  0x23   :  { %396 = vmatpush3.bf16.msra.mxu1 %v395_v17  ;;  %406 = vmatprep.subr.bf16.mxu0 %v442_v0 }
  0x26   :  { %408 = vmatpush3.bf16.msra.mxu0 %v407_v34 }
  0xec   :  { %v120_v28 = vpop.f32.mrb[0].mxu0 }
  0xed   :  { %v121_v29 = vadd.f32 %v310_v27, %v120_v28  ;;  %v343_v30 = vpop.f32.mrb[1].mxu0 }
  0xef   :  { %v124_v31 = vmax.f32 %v121_v29, 0.0 }
  0xf1   :  { %361 = vmatmul.mubr.msk.f32.vlgmr.msra.gmra.mrb[0].mxu1 %vm140_vm2, %v124_v31 }
 0x1c4   :  { %v210_v36 = vpop.f32.mrb[0].mxu1 }
 0x1c5   :  { %v211_v37 = vadd.f32 %v312_v35, %v210_v36  ;;  %v362_v38 = vpop.f32.mrb[1].mxu1 }
 0x1c7   :  { %v214_v39 = vmax.f32 %v211_v37, 0.0 }
 0x1c9   :  { %380 = vmatmul.mubr.msk.f32.vlgmr.msra.gmra.mrb[2].mxu0 %vm140_vm2, %v214_v39 }
 0x29c   :  { %v299_v41 = vpop.f32.mrb[2].mxu0 }
 0x29d   :  { %v300_v42 = vadd.f32 %v314_v40, %v299_v41  ;;  %v381_v43 = vpop.f32.mrb[3].mxu0 }
 0x29f   :  { %304 = vst.msk [vmem:[%s570_s7] sm:$0xff] %vm303_vm3, %v300_v42 }
 0x2a0   :  { %309 = vsyncpa [#allocation3], 1 }

</bundles_post_ra>
